<compile_context>
chip_gen: v7x
topology: tpu7x:2x2x1
jax: 0.10.0
libtpu: 0.0.40
codegen_flags: <defaults>
</compile_context>

<pallas_src>
import functools

import jax
import jax.numpy as jnp
import numpy as np
from jax.experimental import pallas as pl
from jax.experimental.pallas import tpu as pltpu


# ---------------------------------------------------------------------------
# tiling helpers
# ---------------------------------------------------------------------------
def _round_up(n, m):
    return ((n + m - 1) // m) * m


def _pick_b_tile(b, max_tile=256, align=32, min_blocks=2):
    """B (sublane) tile: full-dim block for small B, otherwise a multiple of
    `align` (int8 sublane tile) chosen so the 'parallel' B axis has at least
    `min_blocks` blocks (keeps both v7x TensorCores busy; no-op on v5e/v6e)."""
    if b < align * min_blocks:
        return b                                   # single full-dim block
    return min(max_tile, _round_up(-(-b // min_blocks), align))


def _pick_s_tile(s, max_tile=2048):
    """S (lane) tile: full-dim block if it fits, else `max_tile` (x128)."""
    return s if s <= max_tile else max_tile


# ---------------------------------------------------------------------------
# Pallas kernels: 'ae' branch (per-sequence masked stats)
# ---------------------------------------------------------------------------
def _ae_sup_kernel(packed_ref, logit_ref, out_ref, *, s_total, s_tile):
    """Supervised 'ae' stats.

    packed_ref : (bt, st)    int8  target class in [0,3), 3 == padding
    logit_ref  : (3, bt, st) logits (class planes, S on the lane axis)
    out_ref    : (bt, 2)     f32   [sum ll_target, token count], accumulated
                 over the S ("arbitrary") axis, length-normalised at the end.
    """
    j = pl.program_id(1)

    @pl.when(j == 0)
    def _init():
        out_ref[...] = jnp.zeros_like(out_ref)

    p = packed_ref[...].astype(jnp.int32)                    # (bt, st)
    valid = p != 3
    if s_total % s_tile != 0:                                # static check
        s_idx = jax.lax.broadcasted_iota(jnp.int32, p.shape, 1)
        valid = jnp.logical_and(valid, s_idx < (s_total - j * s_tile))

    x0 = logit_ref[0].astype(jnp.float32)
    x1 = logit_ref[1].astype(jnp.float32)
    x2 = logit_ref[2].astype(jnp.float32)

    m = jnp.maximum(jnp.maximum(x0, x1), x2)
    sum_e = jnp.exp(x0 - m) + jnp.exp(x1 - m) + jnp.exp(x2 - m)
    lse = m + jnp.log(sum_e)

    # log_softmax at the target class via per-plane select (no one-hot).
    x_t = jnp.where(p == 0, x0, jnp.where(p == 1, x1, x2))
    ll_t = jnp.where(valid, x_t - lse, 0.0)                  # where() kills garbage/NaN
    cnt = valid.astype(jnp.float32)

    out_ref[...] += jnp.concatenate(
        [jnp.sum(ll_t, axis=-1, keepdims=True),
         jnp.sum(cnt, axis=-1, keepdims=True)],
        axis=-1)                                             # (bt, 2)

    @pl.when(j == pl.num_programs(1) - 1)
    def _finalize():
        stats = out_ref[...]
        # one reciprocal; clamp so an all-padding sequence yields 0, not NaN.
        inv_len = pl.reciprocal(jnp.maximum(stats[:, 1:2], 1.0), approx=False)
        out_ref[...] = stats * inv_len


def _ae_pseudo_kernel(mask_ref, logit_ref, out_ref, *, s_total, s_tile):
    """Pseudo-label 'ae' stats (targets are never read / DMA'd).

    mask_ref  : (bt, st)    int8  1 == valid token, 0 == padding
    logit_ref : (3, bt, st) logits
    out_ref   : (bt, 3)     f32   [sum ll_argmax, sum max_prob, token count]
    """
    j = pl.program_id(1)

    @pl.when(j == 0)
    def _init():
        out_ref[...] = jnp.zeros_like(out_ref)

    valid = mask_ref[...].astype(jnp.int32) != 0
    if s_total % s_tile != 0:
        s_idx = jax.lax.broadcasted_iota(jnp.int32, valid.shape, 1)
        valid = jnp.logical_and(valid, s_idx < (s_total - j * s_tile))

    x0 = logit_ref[0].astype(jnp.float32)
    x1 = logit_ref[1].astype(jnp.float32)
    x2 = logit_ref[2].astype(jnp.float32)

    m = jnp.maximum(jnp.maximum(x0, x1), x2)
    sum_e = jnp.exp(x0 - m) + jnp.exp(x1 - m) + jnp.exp(x2 - m)
    log_sum = jnp.log(sum_e)

    ll_p = jnp.where(valid, -log_sum, 0.0)                       # log p(argmax)
    maxp = jnp.where(valid, pl.reciprocal(sum_e, approx=False), 0.0)
    cnt = valid.astype(jnp.float32)

    out_ref[...] += jnp.concatenate(
        [jnp.sum(ll_p, axis=-1, keepdims=True),
         jnp.sum(maxp, axis=-1, keepdims=True),
         jnp.sum(cnt, axis=-1, keepdims=True)],
        axis=-1)                                                 # (bt, 3)

    @pl.when(j == pl.num_programs(1) - 1)
    def _finalize():
        stats = out_ref[...]
        inv_len = pl.reciprocal(jnp.maximum(stats[:, 2:3], 1.0), approx=False)
        out_ref[...] = stats * inv_len


# ---------------------------------------------------------------------------
# Pallas kernel: classification branch
# ---------------------------------------------------------------------------
def _ce_kernel(logit_ref, tgt_ref, out_ref):
    """Per-row CE stats; B on the lane axis.

    logit_ref : (C, bt) logits
    tgt_ref   : (1, bt) int32 targets
    out_ref   : (3, bt) f32   [ce(target), ce(argmax), max_prob]
    """
    x = logit_ref[...].astype(jnp.float32)            # (C, bt)
    tgt = tgt_ref[...]                                # (1, bt)

    m = jnp.max(x, axis=0, keepdims=True)
    e = jnp.exp(x - m)
    sum_e = jnp.sum(e, axis=0, keepdims=True)
    lse = m + jnp.log(sum_e)

    cls_idx = jax.lax.broadcasted_iota(jnp.int32, x.shape, 0)
    x_t = jnp.sum(jnp.where(cls_idx == tgt, x, 0.0), axis=0, keepdims=True)

    ce = lse - x_t                                    # nll(targets)
    ce_p = lse - m                                    # nll(argmax pseudo-targets)
    maxp = pl.reciprocal(sum_e, approx=False)         # max softmax probability

    out_ref[...] = jnp.concatenate([ce, ce_p, maxp], axis=0)   # (3, bt)


# ---------------------------------------------------------------------------
# pallas_call wrappers
# ---------------------------------------------------------------------------
def ae_stats(text, targets, logits, *, pseudo,
             max_b_tile=256, max_s_tile=2048, class_major=False):
    """Per-sequence masked stats for the 'ae' task.

    Returns:
      pseudo=False -> ll_target_mean            (B,)
      pseudo=True  -> (ll_argmax_mean, maxp_mean)  each (B,)
    """
    if class_major:
        C, B, S = logits.shape
        logits_cbs = logits
    else:
        B, S, C = logits.shape
        # TODO(synk): ideally the producer emits logits as (3, B, S); this
        # transpose is the last remaining extra HBM pass over the logits.
        logits_cbs = jnp.moveaxis(logits, -1, 0)
    assert C == 3, "the 'ae' branch is hard-coded to 3 classes (as in the torch module)"

    # One fused wrapper pass packs the aux info into a single int8 plane.
    if pseudo:
        packed = (text != 0).astype(jnp.int8)                   # validity flag only
        kernel = _ae_pseudo_kernel
        ncols = 3
    else:
        packed = jnp.where(text != 0, targets, 3).astype(jnp.int8)
        kernel = _ae_sup_kernel
        ncols = 2

    bt = _pick_b_tile(B, max_b_tile)     # full dim, or multiple of 32 (int8 tile)
    st = _pick_s_tile(S, max_s_tile)     # full dim, or multiple of 128
    grid = (pl.cdiv(B, bt), pl.cdiv(S, st))

    out = pl.pallas_call(
        functools.partial(kernel, s_total=S, s_tile=st),
        out_shape=jax.ShapeDtypeStruct((B, ncols), jnp.float32),
        grid_spec=pltpu.PrefetchScalarGridSpec(
            num_scalar_prefetch=0,
            grid=grid,
            in_specs=[
                pl.BlockSpec((bt, st), lambda i, j: (i, j)),        # packed aux
                pl.BlockSpec((3, bt, st), lambda i, j: (0, i, j)),  # logits
            ],
            out_specs=pl.BlockSpec((bt, ncols), lambda i, j: (i, 0)),
        ),
        compiler_params=pltpu.CompilerParams(
            dimension_semantics=("parallel", "arbitrary"),
            vmem_limit_bytes=48 * 1024 * 1024,
        ),
    )(packed, logits_cbs)

    if pseudo:
        return out[:, 0], out[:, 1]
    return out[:, 0]


def ce_stats(logits, targets, *, max_b_tile=512):
    """Per-row [ce(targets), ce(argmax), max-prob] for the classification task."""
    # TODO(synk): for vocab-scale C this needs a C-tiled ("arbitrary" axis)
    # online max/LSE accumulator; here C is tiny so it stays a single block.
    B, C = logits.shape
    bt = B if B <= max_b_tile else max_b_tile     # lane axis: full dim or x128
    grid = (pl.cdiv(B, bt),)

    logits_t = logits.T                            # (C, B): B on the lane axis
    tgt = targets.astype(jnp.int32).reshape(1, B)

    out = pl.pallas_call(
        _ce_kernel,
        out_shape=jax.ShapeDtypeStruct((3, B), jnp.float32),
        grid_spec=pltpu.PrefetchScalarGridSpec(
            num_scalar_prefetch=0,
            grid=grid,
            in_specs=[
                pl.BlockSpec((C, bt), lambda i: (0, i)),
                pl.BlockSpec((1, bt), lambda i: (0, i)),
            ],
            out_specs=pl.BlockSpec((3, bt), lambda i: (0, i)),
        ),
        compiler_params=pltpu.CompilerParams(
            dimension_semantics=("parallel",),
            vmem_limit_bytes=48 * 1024 * 1024,
        ),
    )(logits_t, tgt)

    return out[0], out[1], out[2]


# ---------------------------------------------------------------------------
# Module equivalent
# ---------------------------------------------------------------------------
class Opt:
    def __init__(self, alpha=5.0, beta=0.7, learned_beta=False, hard_D=False):
        self.alpha = alpha
        self.beta = beta
        self.learned_beta = learned_beta
        self.hard_D = hard_D


class CELossPallas:
    """Pallas port of CE_Loss.forward (static task/pseudo flags resolved host-side)."""

    def __init__(self, opt, model_threshold=0.8):
        self.opt = opt
        # TODO(synk): model.threshold is a learned nn.Parameter in torch; a fixed
        # stand-in scalar is used here.
        self.model_threshold = jnp.float32(model_threshold)

    def _weight(self, maxp):
        beta = (jax.nn.sigmoid(self.model_threshold)
                if self.opt.learned_beta else self.opt.beta)
        if self.opt.hard_D:
            return (maxp > beta).astype(jnp.float32)
        return jax.nn.sigmoid(self.opt.alpha * (maxp - beta))

    def forward(self, inputs, outputs, targets, task,
                gamma=None, pseudo=False, inference=False):
        if task == 'ae':
            text = inputs[0]
            if pseudo:
                ll_p, maxp = ae_stats(text, targets, outputs, pseudo=True)
                weight = self._weight(maxp)
                loss = -jnp.mean(weight * ll_p)
            else:
                ll_t = ae_stats(text, targets, outputs, pseudo=False)
                loss = -jnp.mean(ll_t)
        else:
            ce, ce_p, maxp = ce_stats(outputs, targets)
            if pseudo:
                weight = self._weight(maxp)
                loss = gamma * jnp.sum(weight * ce_p) / (jnp.sum(weight) + 1e-6)
            else:
                loss = jnp.mean(ce)

        if pseudo and inference:
            return loss, weight
        return loss


# ---------------------------------------------------------------------------
# Pure-JAX references (correctness check only)
# ---------------------------------------------------------------------------
def _ref_ae(text, logits, targets, pseudo, opt):
    mask = (text != 0).astype(jnp.float32)
    tlen = mask.sum(-1)
    logsm = jax.nn.log_softmax(logits, -1)
    if pseudo:
        maxp = jax.nn.softmax(logits, -1).max(-1)
        maxp = (maxp * mask).sum(-1) / tlen
        weight = jax.nn.sigmoid(opt.alpha * (maxp - opt.beta))
        oh = jax.nn.one_hot(jnp.argmax(logits, -1), 3)
        ll = ((oh * logsm).sum(-1) * mask).sum(-1) / tlen
        return -jnp.mean(weight * ll), weight
    oh = jax.nn.one_hot(targets, 3)
    ll = ((oh * logsm).sum(-1) * mask).sum(-1) / tlen
    return -jnp.mean(ll)


def _ref_cls(logits, targets, pseudo, opt, gamma=None):
    logsm = jax.nn.log_softmax(logits, -1)
    if pseudo:
        maxp = jax.nn.softmax(logits, -1).max(-1)
        weight = jax.nn.sigmoid(opt.alpha * (maxp - opt.beta))
        pt = jnp.argmax(logits, -1)
        ce = -jnp.take_along_axis(logsm, pt[:, None], 1)[:, 0]
        return gamma * jnp.sum(weight * ce) / (weight.sum() + 1e-6)
    ce = -jnp.take_along_axis(logsm, targets[:, None], 1)[:, 0]
    return jnp.mean(ce)


# ---------------------------------------------------------------------------
if __name__ == "__main__":
    key = jax.random.PRNGKey(0)
    B, S, C_AE, C_CLS = 2, 8, 3, 5
    k1, k2, k3, k4, k5, k6, k7, k8, k9, k10, k11 = jax.random.split(key, 11)

    # ---- small shapes: drive the full module (all four branches) ----
    text = jax.random.randint(k1, (B, S), 1, 100)
    lengths = jnp.array([6, 8])
    text = jnp.where(jnp.arange(S)[None, :] < lengths[:, None], text, 0).astype(jnp.int32)
    ae_logits = jax.random.normal(k2, (B, S, C_AE), dtype=jnp.float32)
    ae_targets = jax.random.randint(k3, (B, S), 0, C_AE).astype(jnp.int32)

    cls_logits = jax.random.normal(k4, (B, C_CLS), dtype=jnp.float32)
    cls_targets = jax.random.randint(k5, (B,), 0, C_CLS).astype(jnp.int32)

    opt = Opt(alpha=5.0, beta=0.7, learned_beta=False, hard_D=False)
    loss_fn = CELossPallas(opt)

    loss_ae = loss_fn.forward((text,), ae_logits, ae_targets, task='ae')
    loss_ae_ps, w_ae = loss_fn.forward((text,), ae_logits, ae_targets, task='ae',
                                       pseudo=True, inference=True)
    loss_cls = loss_fn.forward((), cls_logits, cls_targets, task='cls')
    loss_cls_ps = loss_fn.forward((), cls_logits, cls_targets, task='cls',
                                  gamma=0.5, pseudo=True)
    jax.block_until_ready((loss_ae, loss_ae_ps, w_ae, loss_cls, loss_cls_ps))

    ref_ae = _ref_ae(text, ae_logits, ae_targets, False, opt)
    ref_ae_ps, ref_w = _ref_ae(text, ae_logits, ae_targets, True, opt)
    ref_cls = _ref_cls(cls_logits, cls_targets, False, opt)
    ref_cls_ps = _ref_cls(cls_logits, cls_targets, True, opt, gamma=0.5)

    np.testing.assert_allclose(np.asarray(loss_ae), np.asarray(ref_ae), rtol=1e-5, atol=1e-5)
    np.testing.assert_allclose(np.asarray(loss_ae_ps), np.asarray(ref_ae_ps), rtol=1e-5, atol=1e-5)
    np.testing.assert_allclose(np.asarray(w_ae), np.asarray(ref_w), rtol=1e-5, atol=1e-5)
    np.testing.assert_allclose(np.asarray(loss_cls), np.asarray(ref_cls), rtol=1e-5, atol=1e-5)
    np.testing.assert_allclose(np.asarray(loss_cls_ps), np.asarray(ref_cls_ps), rtol=1e-5, atol=1e-5)

    # ---- ragged shapes: force B- and S-tiling (in-kernel edge masking) ----
    B2, S2 = 80, 300
    lengths2 = jax.random.randint(k6, (B2,), 1, S2 + 1)
    text2 = jax.random.randint(k7, (B2, S2), 1, 100)
    text2 = jnp.where(jnp.arange(S2)[None, :] < lengths2[:, None], text2, 0).astype(jnp.int32)
    ae_logits2 = jax.random.normal(k8, (B2, S2, C_AE), dtype=jnp.float32)
    ae_targets2 = jax.random.randint(k9, (B2, S2), 0, C_AE).astype(jnp.int32)

    mask2 = (text2 != 0).astype(jnp.float32)
    len2 = mask2.sum(-1)
    logsm2 = jax.nn.log_softmax(ae_logits2, -1)

    ll_sup = ae_stats(text2, ae_targets2, ae_logits2, pseudo=False,
                      max_b_tile=64, max_s_tile=128)
    ll_sup_ref = ((jax.nn.one_hot(ae_targets2, 3) * logsm2).sum(-1) * mask2).sum(-1) / len2
    np.testing.assert_allclose(np.asarray(ll_sup), np.asarray(ll_sup_ref), rtol=1e-5, atol=1e-5)

    ll_ps, maxp_ps = ae_stats(text2, ae_targets2, ae_logits2, pseudo=True,
                              max_b_tile=64, max_s_tile=128)
    ll_ps_ref = (logsm2.max(-1) * mask2).sum(-1) / len2
    maxp_ref = (jax.nn.softmax(ae_logits2, -1).max(-1) * mask2).sum(-1) / len2
    np.testing.assert_allclose(np.asarray(ll_ps), np.asarray(ll_ps_ref), rtol=1e-5, atol=1e-5)
    np.testing.assert_allclose(np.asarray(maxp_ps), np.asarray(maxp_ref), rtol=1e-5, atol=1e-5)

    B3 = 300
    cls_logits3 = jax.random.normal(k10, (B3, C_CLS), dtype=jnp.float32)
    cls_targets3 = jax.random.randint(k11, (B3,), 0, C_CLS).astype(jnp.int32)
    ce3, cep3, maxp3 = ce_stats(cls_logits3, cls_targets3, max_b_tile=128)
    logsm3 = jax.nn.log_softmax(cls_logits3, -1)
    np.testing.assert_allclose(
        np.asarray(ce3),
        np.asarray(-jnp.take_along_axis(logsm3, cls_targets3[:, None], 1)[:, 0]),
        rtol=1e-5, atol=1e-5)
    np.testing.assert_allclose(np.asarray(cep3), np.asarray(-logsm3.max(-1)),
                               rtol=1e-5, atol=1e-5)
    np.testing.assert_allclose(np.asarray(maxp3),
                               np.asarray(jax.nn.softmax(cls_logits3, -1).max(-1)),
                               rtol=1e-5, atol=1e-5)

    print("KERNEL_OK")
</pallas_src>

<mosaic_0001>
module attributes {stable_mosaic.version = 11 : i64} {
  func.func @_ae_sup_kernel(%arg0: i32, %arg1: i32, %arg2: memref<2x8xi8, #tpu.memory_space<vmem>>, %arg3: memref<3x2x8xf32, #tpu.memory_space<vmem>>, %arg4: memref<2x2xf32, #tpu.memory_space<vmem>>) attributes {dimension_semantics = [#tpu.dimension_semantics<parallel>, #tpu.dimension_semantics<arbitrary>], iteration_bounds = array<i64: 1, 1>, scalar_prefetch = 0 : i64, scratch_operands = 0 : i64, tpu.core_type = #tpu.core_type<tc>, window_params = [{transform_indices = @transform_0, window_bounds = array<i64: 2, 8>}, {transform_indices = @transform_1, window_bounds = array<i64: 3, 2, 8>}, {transform_indices = @transform_2, window_bounds = array<i64: 2, 2>}]} {
    %c0_i32 = arith.constant 0 : i32
    %0 = arith.cmpi eq, %arg1, %c0_i32 : i32
    %1 = arith.extui %0 : i1 to i32
    %c0_i32_0 = arith.constant 0 : i32
    %2 = arith.cmpi ne, %1, %c0_i32_0 : i32
    scf.if %2 {
      %cst_18 = arith.constant 0.000000e+00 : f32
      %47 = vector.broadcast %cst_18 : f32 to vector<2x2xf32>
      %c0_19 = arith.constant 0 : index
      %c0_20 = arith.constant 0 : index
      %48 = vector.load %arg4[%c0_19, %c0_20] : memref<2x2xf32, #tpu.memory_space<vmem>>, vector<2x2xf32>
      tpu.vector_store %arg4[%c0_19, %c0_20], %47 {strides = array<i32>} : memref<2x2xf32, #tpu.memory_space<vmem>>, vector<2x2xf32>,
    } else {
    }
    %c0 = arith.constant 0 : index
    %c0_1 = arith.constant 0 : index
    %3 = vector.load %arg2[%c0, %c0_1] : memref<2x8xi8, #tpu.memory_space<vmem>>, vector<2x8xi8>
    %4 = arith.extsi %3 : vector<2x8xi8> to vector<2x8xi32>
    %c3_i32 = arith.constant 3 : i32
    %5 = vector.broadcast %c3_i32 : i32 to vector<2x8xi32>
    %6 = arith.cmpi ne, %4, %5 : vector<2x8xi32>
    %c0_2 = arith.constant 0 : index
    %c0_3 = arith.constant 0 : index
    %c0_4 = arith.constant 0 : index
    %7 = vector.load %arg3[%c0_2, %c0_3, %c0_4] : memref<3x2x8xf32, #tpu.memory_space<vmem>>, vector<1x2x8xf32>
    %8 = vector.shape_cast %7 : vector<1x2x8xf32> to vector<2x8xf32>
    %c1 = arith.constant 1 : index
    %c0_5 = arith.constant 0 : index
    %c0_6 = arith.constant 0 : index
    %9 = vector.load %arg3[%c1, %c0_5, %c0_6] : memref<3x2x8xf32, #tpu.memory_space<vmem>>, vector<1x2x8xf32>
    %10 = vector.shape_cast %9 : vector<1x2x8xf32> to vector<2x8xf32>
    %c2 = arith.constant 2 : index
    %c0_7 = arith.constant 0 : index
    %c0_8 = arith.constant 0 : index
    %11 = vector.load %arg3[%c2, %c0_7, %c0_8] : memref<3x2x8xf32, #tpu.memory_space<vmem>>, vector<1x2x8xf32>
    %12 = vector.shape_cast %11 : vector<1x2x8xf32> to vector<2x8xf32>
    %13 = arith.maximumf %8, %10 : vector<2x8xf32>
    %14 = arith.maximumf %13, %12 : vector<2x8xf32>
    %15 = arith.subf %8, %14 : vector<2x8xf32>
    %16 = math.exp %15 : vector<2x8xf32>
    %17 = arith.subf %10, %14 : vector<2x8xf32>
    %18 = math.exp %17 : vector<2x8xf32>
    %19 = arith.addf %16, %18 : vector<2x8xf32>
    %20 = arith.subf %12, %14 : vector<2x8xf32>
    %21 = math.exp %20 : vector<2x8xf32>
    %22 = arith.addf %19, %21 : vector<2x8xf32>
    %23 = math.log %22 : vector<2x8xf32>
    %24 = arith.addf %14, %23 : vector<2x8xf32>
    %c0_i32_9 = arith.constant 0 : i32
    %25 = vector.broadcast %c0_i32_9 : i32 to vector<2x8xi32>
    %26 = arith.cmpi eq, %4, %25 : vector<2x8xi32>
    %c1_i32 = arith.constant 1 : i32
    %27 = vector.broadcast %c1_i32 : i32 to vector<2x8xi32>
    %28 = arith.cmpi eq, %4, %27 : vector<2x8xi32>
    %29 = arith.select %28, %10, %12 : vector<2x8xi1>, vector<2x8xf32>
    %30 = arith.select %26, %8, %29 : vector<2x8xi1>, vector<2x8xf32>
    %31 = arith.subf %30, %24 : vector<2x8xf32>
    %cst = arith.constant 0.000000e+00 : f32
    %32 = vector.broadcast %cst : f32 to vector<2x8xf32>
    %33 = arith.select %6, %31, %32 : vector<2x8xi1>, vector<2x8xf32>
    %34 = arith.extui %6 : vector<2x8xi1> to vector<2x8xi32>
    %35 = arith.sitofp %34 : vector<2x8xi32> to vector<2x8xf32>
    %c0_10 = arith.constant 0 : index
    %c0_11 = arith.constant 0 : index
    %36 = vector.load %arg4[%c0_10, %c0_11] : memref<2x2xf32, #tpu.memory_space<vmem>>, vector<2x2xf32>
    %cst_12 = arith.constant dense<0.000000e+00> : vector<2xf32>
    %37 = vector.multi_reduction <add>, %33, %cst_12 [1] : vector<2x8xf32> to vector<2xf32>
    %38 = vector.shape_cast %37 : vector<2xf32> to vector<2x1xf32>
    %cst_13 = arith.constant dense<0.000000e+00> : vector<2xf32>
    %39 = vector.multi_reduction <add>, %35, %cst_13 [1] : vector<2x8xf32> to vector<2xf32>
    %40 = vector.shape_cast %39 : vector<2xf32> to vector<2x1xf32>
    %41 = tpu.concatenate %38, %40 in 1 : vector<2x1xf32>, vector<2x1xf32> -> vector<2x2xf32>
    %42 = arith.addf %36, %41 : vector<2x2xf32>
    %c0_14 = arith.constant 0 : index
    %c0_15 = arith.constant 0 : index
    %43 = vector.load %arg4[%c0_14, %c0_15] : memref<2x2xf32, #tpu.memory_space<vmem>>, vector<2x2xf32>
    tpu.vector_store %arg4[%c0_14, %c0_15], %42 {strides = array<i32>} : memref<2x2xf32, #tpu.memory_space<vmem>>, vector<2x2xf32>,
    %c0_i32_16 = arith.constant 0 : i32
    %44 = arith.cmpi eq, %arg1, %c0_i32_16 : i32
    %45 = arith.extui %44 : i1 to i32
    %c0_i32_17 = arith.constant 0 : i32
    %46 = arith.cmpi ne, %45, %c0_i32_17 : i32
    scf.if %46 {
      %c0_18 = arith.constant 0 : index
      %c0_19 = arith.constant 0 : index
      %47 = vector.load %arg4[%c0_18, %c0_19] : memref<2x2xf32, #tpu.memory_space<vmem>>, vector<2x2xf32>
      %48 = vector.extract_strided_slice %47 {offsets = [0, 1], sizes = [2, 1], strides = [1, 1]} : vector<2x2xf32> to vector<2x1xf32>
      %cst_20 = arith.constant 1.000000e+00 : f32
      %49 = vector.broadcast %cst_20 : f32 to vector<2x1xf32>
      %50 = arith.maximumf %48, %49 : vector<2x1xf32>
      %51 = tpu.reciprocal %50 : vector<2x1xf32> -> vector<2x1xf32>
      %52 = vector.broadcast %51 : vector<2x1xf32> to vector<2x2xf32>
      %53 = arith.mulf %47, %52 : vector<2x2xf32>
      %c0_21 = arith.constant 0 : index
      %c0_22 = arith.constant 0 : index
      %54 = vector.load %arg4[%c0_21, %c0_22] : memref<2x2xf32, #tpu.memory_space<vmem>>, vector<2x2xf32>
      tpu.vector_store %arg4[%c0_21, %c0_22], %53 {strides = array<i32>} : memref<2x2xf32, #tpu.memory_space<vmem>>, vector<2x2xf32>,
    } else {
    }
    return
  }
  func.func @transform_0(%arg0: i32, %arg1: i32) -> (i32, i32) {
    %c0_i32 = arith.constant 0 : i32
    return %arg0, %arg1 : i32, i32
  }
  func.func @transform_1(%arg0: i32, %arg1: i32) -> (i32, i32, i32) {
    %c0_i32 = arith.constant 0 : i32
    %c0_i32_0 = arith.constant 0 : i32
    return %c0_i32, %arg0, %arg1 : i32, i32, i32
  }
  func.func @transform_2(%arg0: i32, %arg1: i32) -> (i32, i32) {
    %c0_i32 = arith.constant 0 : i32
    %c0_i32_0 = arith.constant 0 : i32
    return %arg0, %c0_i32 : i32, i32
  }
}

</mosaic_0001>

<bundles_post_ra>
// kernel: tpu_custom_call.1
= control target key start
LH: loop header
LB: loop body
LE: loop exit
PB: predicated region body
PF: predicated region fallthrough
CT: control target
= control target key end

     0   :  { %7 = vsyncpa [#allocation3], 0  ;;  %s278_s0 = inlined_call_operand.hbm [shape: s8[2,8], index: 0, kind: input, shape index: {}]   ;;  %s279_s1 = inlined_call_operand.hbm [shape: f32[3,2,8], index: 1, kind: input, shape index: {}]   ;;  %s280_s2 = inlined_call_operand.hbm [shape: f32[2,2], index: 2, kind: output, shape index: {}]  }
   0x1   :  { %8 = vsyncpa [#allocation6], 0 }
   0x2   :  { %9 = vsyncpa [#allocation4], 0  ;;  %s210_s9 = smov [#allocation2]   ;;  %s211_s11 = smov [#allocation5]  }
   0x3   :  { %s16_s10 = sshll.u32 %s210_s9, 4  ;;  %s25_s12 = sshll.u32 %s211_s11, 4  ;;  %s17_s10 = int_to_ptr.vmem [resolvable:$true] %s16_s10  ;;  %s232_s12 = int_to_ptr.vmem [resolvable:$true] %s25_s12 }
   0x4   :  { %s138_s15 = scalar_lea.hbm %s278_s0, 16 }
   0x5   :  { %p139_p0 = scmp.ne.s32.totalorder %s278_s0, %s138_s15  ;;  %p142_p1 = scmp.lt.u32.totalorder %s138_s15, %s278_s0 }
   0x7   :  { %p144_p2 = pnand %p142_p1, %p139_p0 }
   0x9   :  { %147 = shalt.err (!%p144_p2)
}
   0xa   :  { %s148_s20 = scalar_lea.vmem %s17_s10, 16  ;;  %s152_s21 = scalar_lea.vmem %s17_s10, 32 }
   0xb   :  { %p149_p3 = scmp.ne.s32.totalorder %s17_s10, %s148_s20  ;;  %p153_p4 = scmp.lt.s32.totalorder %s17_s10, %s17_s10 }
   0xc   :  { %p154_p5 = scmp.lt.s32.totalorder %s152_s21, %s148_s20 }
   0xe   :  { %p155_p6 = por %p154_p5, %p153_p4 }
  0x10   :  { %p156_p7 = pnand %p155_p6, %p149_p3 }
  0x12   :  { %159 = shalt.err (!%p156_p7)
}
  0x13   :  { %19 = dma.hbm_to_vmem [thread:$0]  %s278_s0, 16, %s17_s10, [#allocation3]  }
  0x14   :  { %s160_s26 = scalar_lea.hbm %s279_s1, 96 }
  0x15   :  { %p161_p8 = scmp.ne.s32.totalorder %s279_s1, %s160_s26  ;;  %p164_p9 = scmp.lt.u32.totalorder %s160_s26, %s279_s1 }
  0x17   :  { %p166_p10 = pnand %p164_p9, %p161_p8 }
  0x19   :  { %169 = shalt.err (!%p166_p10)
}
  0x1a   :  { %s170_s3 = scalar_lea.vmem %s232_s12, 96  ;;  %p175_p12 = scmp.lt.s32.totalorder %s232_s12, %s232_s12 }
  0x1b   :  { %p171_p11 = scmp.ne.s32.totalorder %s232_s12, %s170_s3  ;;  %p176_p13 = scmp.lt.s32.totalorder %s170_s3, %s170_s3 }
  0x1d   :  { %p177_p0 = por %p176_p13, %p175_p12 }
  0x1f   :  { %p178_p1 = pnand %p177_p0, %p171_p11 }
  0x21   :  { %181 = shalt.err (!%p178_p1)
}
  0x22   :  { %s212_s0 = smov 32   ;;  %s213_s4 = smov 2  }
  0x23   :  { %31 = dma.hbm_to_vmem [thread:$0]  %s279_s1, 96, %s232_s12, [#allocation6], %s212_s0, %s212_s0, %s213_s4  }
  0x24   :  { %204 = dma.done.wait [#allocation3], 16  }
  0x25   :  { %205 = vsyncadd [#allocation3], 4294967280 }
  0x26   :  { %206 = dma.done.wait [#allocation6], 96  }
  0x27   :  { %207 = vsyncadd [#allocation6], 4294967200  ;;  %vm42_vm0 = vcmask 9216   ;;  %v214_v0 = vmov 0.0   ;;  %v47_v1 = vld [vmem:[#allocation5] sm:$0x3] }
  0x28   :  { %43 = vst.msk [vmem:[#allocation7] sm:$0x3] %vm42_vm0, %v214_v0  ;;  %v49_v2 = vld [vmem:[#allocation5 + $0x2] sm:$0x3]  ;;  %v51_v3 = vld [vmem:[#allocation5 + $0x4] sm:$0x3] }
  0x29   :  { %v52_v4 = vmax.f32 %v47_v1, %v49_v2  ;;  %v44_v17 = vld [vmem:[#allocation2] sm:$0x1]  ;;  %vm77_vm4 = vcmask 58368   ;;  %v215_v29 = vmov 1   ;;  %vm84_vm5 = vcmask 7168   ;;  %s216_s1 = smov [#allocation7]  }
  0x2a   :  { %v45_v18 = vunpack.c.0.s8 %v44_v17  ;;  %126 = vset.pattern.permute.xlu1 %v215_v29  ;;  %127 = vset.pattern.permute.xlu0 %v215_v29  ;;  %s108_s7 = sshll.u32 %s216_s1, 4  ;;  %s109_s7 = int_to_ptr.vmem [resolvable:$true] %s108_s7 }
  0x2b   :  { %v53_v5 = vmax.f32 %v52_v4, %v51_v3  ;;  %s182_s8 = scalar_lea.vmem %s109_s7, 32  ;;  %p187_p3 = scmp.lt.s32.totalorder %s109_s7, %s109_s7 }
  0x2c   :  { %vm69_vm1 = vcmp.eq.s32.totalorder %v45_v18, 1  ;;  %vm68_vm2 = vcmp.eq.s32.totalorder %v45_v18, 0  ;;  %vm46_vm3 = vcmp.ne.s32.totalorder %v45_v18, 3  ;;  %p183_p2 = scmp.ne.s32.totalorder %s109_s7, %s182_s8  ;;  %p188_p4 = scmp.lt.s32.totalorder %s182_s8, %s182_s8 }
  0x2d   :  { %v54_v6 = vsub.f32 %v47_v1, %v53_v5  ;;  %v57_v7 = vsub.f32 %v49_v2, %v53_v5  ;;  %v61_v8 = vsub.f32 %v51_v3, %v53_v5  ;;  %v70_v19 = vsel %vm69_vm1, %v49_v2, %v51_v3 }
  0x2e   :  { %v71_v22 = vsel %vm68_vm2, %v47_v1, %v70_v19  ;;  %v118_v26 = vsel %vm46_vm3, 1.0, %v214_v0  ;;  %p189_p5 = por %p188_p4, %p187_p3 }
  0x2f   :  { %v55_v9 = vmul.f32 1.442695, %v54_v6  ;;  %v58_v10 = vmul.f32 1.442695, %v57_v7  ;;  %v62_v11 = vmul.f32 1.442695, %v61_v8 }
  0x30   :  { %v81_v28 = vsel %vm77_vm4, %v118_v26, 0.0  ;;  %v76_v31 = vld [vmem:[#allocation7] sm:$0x3]  ;;  %p190_p6 = pnand %p189_p5, %p183_p2 }
  0x31   :  { %128 = vpow2.f32 %v55_v9 }
  0x32   :  { %130 = vpow2.f32 %v58_v10 }
  0x33   :  { %132 = vpow2.f32 %v62_v11 }
  0x3b   :  { %v129_v12 = vpop.eup %128 }
  0x3c   :  { %v131_v13 = vpop.eup %130 }
  0x3d   :  { %v133_v14 = vpop.eup %132  ;;  %v60_v15 = vadd.f32 %v131_v13, %v129_v12 }
  0x3f   :  { %v64_v16 = vadd.f32 %v133_v14, %v60_v15 }
  0x41   :  { %134 = vlog2.f32 %v64_v16 }
  0x4b   :  { %v135_v20 = vpop.eup %134 }
  0x4c   :  { %v66_v21 = vmul.f32 0.6931472, %v135_v20 }
  0x4e   :  { %v67_v23 = vadd.f32 %v66_v21, %v53_v5 }
  0x50   :  { %v72_v24 = vsub.f32 %v71_v22, %v67_v23 }
  0x52   :  { %v73_v25 = vsel %vm46_vm3, %v72_v24, 0.0 }
  0x53   :  { %v78_v27 = vsel %vm77_vm4, %v73_v25, 0.0 }
  0x54   :  { %79 = vadd.xlane.f32.xlu0 %v78_v27 }
  0x58   :  { %82 = vadd.xlane.f32.xlu0 %v81_v28 }
  0xe1   :  { %v80_v30 = vpop.xlane.xlu0 %79 }
  0xe5   :  { %v83_v32 = vpop.xlane.xlu0 %82 }
  0xe6   :  { %v85_v33 = vsel %vm84_vm5, %v80_v30, %v83_v32 }
  0xe7   :  { %v86_v34 = vadd.f32 %v85_v33, %v76_v31 }
  0xe9   :  { %88 = vst.msk [vmem:[#allocation7] sm:$0x3] %vm42_vm0, %v86_v34 }
  0xf0   :  { %v92_v35 = vld [vmem:[#allocation7] sm:$0x3] }
  0xf1   :  { %v93_v36 = vmax.f32 %v92_v35, 1.0 }
  0xf3   :  { %136 = vrcp.f32 %v93_v36 }
  0xfd   :  { %v137_v37 = vpop.eup %136 }
  0xfe   :  { %97 = vperm.xlu1 %126, %v137_v37  }
 0x17d   :  { %v98_v38 = vpop.permute.xlu1 %97 }
 0x17e   :  { %v100_v39 = vmul.f32 %v98_v38, %v92_v35 }
 0x180   :  { %101 = vst.msk [vmem:[#allocation7] sm:$0x3] %vm42_vm0, %v100_v39 }
 0x181   :  { %193 = shalt.err (!%p190_p6)
}
 0x182   :  { %s194_s11 = scalar_lea.hbm %s280_s2, 32 }
 0x183   :  { %p195_p7 = scmp.ne.s32.totalorder %s280_s2, %s194_s11  ;;  %p198_p8 = scmp.lt.u32.totalorder %s194_s11, %s280_s2 }
 0x185   :  { %p200_p9 = pnand %p198_p8, %p195_p7 }
 0x187   :  { %203 = shalt.err (!%p200_p9)
}
 0x188   :  { %111 = dma.vmem_to_hbm [thread:$0]  %s109_s7, 32, %s280_s2, [#allocation4]  }
 0x189   :  { %208 = dma.done.wait [#allocation4], 32  }
 0x18a   :  { %209 = vsyncadd [#allocation4], 4294967264 }
 0x18b   :  { %115 = vsyncpa [#allocation3], 1 }
 0x18c   :  { %116 = vsyncpa [#allocation6], 1 }
 0x18d   :  { %117 = vsyncpa [#allocation4], 1 }

</bundles_post_ra>
